<compile_context>
chip_gen: v7x
topology: tpu7x:2x2x1
jax: 0.10.0
libtpu: 0.0.40
codegen_flags: <defaults>
</compile_context>

<pallas_src>
import jax
import jax.numpy as jnp
from jax import lax
from jax.experimental import pallas as pl
from jax.experimental.pallas import tpu as pltpu


def _pairwise_mlp_kernel(first_ref, second_ref,
                         w1a_ref, w1b_ref, w1c_ref, b1_ref,
                         w2_ref, b2_ref,
                         w3_ref, b3_ref,
                         out_ref):
    f = first_ref[...]           # (tile_m, D) f32, streamed straight from HBM
    s = second_ref[...]          # (tile_m, D) f32
    fs = f * s                   # f32 on the VPU (v5e has no bf16 VALU)

    # Layer 1: concat([f, s, f*s]) @ W1 + b1 as three bf16 MXU matmuls, f32 accumulation.
    acc = jnp.dot(f.astype(jnp.bfloat16), w1a_ref[...],
                  preferred_element_type=jnp.float32)
    acc = acc + jnp.dot(s.astype(jnp.bfloat16), w1b_ref[...],
                        preferred_element_type=jnp.float32)
    acc = acc + jnp.dot(fs.astype(jnp.bfloat16), w1c_ref[...],
                        preferred_element_type=jnp.float32)
    h1 = jnp.maximum(acc + b1_ref[...], 0.0)                          # (tile_m, H) f32

    # Layer 2: Linear + ReLU.
    h2 = jnp.dot(h1.astype(jnp.bfloat16), w2_ref[...],
                 preferred_element_type=jnp.float32)
    h2 = jnp.maximum(h2 + b2_ref[...], 0.0)                           # (tile_m, H) f32

    # Layer 3: (1,H) contracted with (tile_m,H) over H -> (1, tile_m) lane-dense row.
    o = lax.dot_general(w3_ref[...], h2.astype(jnp.bfloat16),
                        dimension_numbers=(((1,), (1,)), ((), ())),
                        preferred_element_type=jnp.float32)           # (1, tile_m)
    out_ref[...] = (o + b3_ref[0]).astype(out_ref.dtype)


def _round_up(x, m):
    return ((x + m - 1) // m) * m


def _pick_tile_m(n):
    # Small / medium N: one grid step, rows padded only to the 8-row sublane granule.
    if n <= 512:
        return _round_up(n, 8)
    # Large N: amortize the ~0.35us/grid-step overhead; (tile_m, H) f32 intermediates
    # stay comfortably inside VMEM.  Sweep {256, 512} when tuning a specific chip.
    return 256


def prepare_params(params):
    """One-time weight layout/dtype preparation (hoisted out of the forward hot path).

    PyTorch Linear weights are (out, in); pre-transpose to (in, out), split W1 into the
    three concat slabs, and cast MXU operands to bf16.  Call once and reuse the result.
    """
    H, threeD = params["w1"].shape
    D = threeD // 3
    assert threeD == 3 * D
    w1_t = params["w1"].T.astype(jnp.float32)             # (3D, H)
    return {
        "w1a": w1_t[:D].astype(jnp.bfloat16),             # (D, H)
        "w1b": w1_t[D:2 * D].astype(jnp.bfloat16),        # (D, H)
        "w1c": w1_t[2 * D:].astype(jnp.bfloat16),         # (D, H)
        "b1": params["b1"].reshape(1, H).astype(jnp.float32),
        "w2": params["w2"].T.astype(jnp.bfloat16),        # (H, H)
        "b2": params["b2"].reshape(1, H).astype(jnp.float32),
        "w3": params["w3"].astype(jnp.bfloat16),          # (1, H): PyTorch layout already (out,in)
        "b3": params["b3"].reshape(1).astype(jnp.float32),
    }


def _build_and_run(first, second, p, *, tile_m, num_tiles, n_pad, d, h,
                   single_buffered_weights):
    if single_buffered_weights:
        def wspec(shape):
            # Constant index_map -> fetched once; one VMEM copy instead of two.
            return pl.BlockSpec(shape, lambda i: (0, 0),
                                pipeline_mode=pl.Buffered(buffer_count=1))
    else:
        def wspec(shape):
            return pl.BlockSpec(shape, lambda i: (0, 0))

    row_spec = pl.BlockSpec((tile_m, d), lambda i: (i, 0))
    n = first.shape[0]
    flops = 2 * n_pad * (3 * d * h + h * h + h)
    bytes_accessed = (2 * n * d * 4                        # streamed f32 activations
                      + (3 * d * h + h * h + h) * 2        # resident bf16 weights
                      + 2 * h * 4 + 4                      # f32 biases
                      + n_pad * 4)                         # f32 output row

    call = pl.pallas_call(
        _pairwise_mlp_kernel,
        out_shape=jax.ShapeDtypeStruct((1, n_pad), jnp.float32),
        grid_spec=pltpu.PrefetchScalarGridSpec(
            num_scalar_prefetch=0,
            grid=(num_tiles,),
            in_specs=[
                row_spec,                 # first   (tile_m, D) f32
                row_spec,                 # second  (tile_m, D) f32
                wspec((d, h)),            # w1a  bf16
                wspec((d, h)),            # w1b  bf16
                wspec((d, h)),            # w1c  bf16
                wspec((1, h)),            # b1   f32
                wspec((h, h)),            # w2   bf16
                wspec((1, h)),            # b2   f32
                wspec((1, h)),            # w3   bf16 row
                pl.BlockSpec(memory_space=pltpu.MemorySpace.SMEM),   # b3 scalar
            ],
            out_specs=pl.BlockSpec((1, tile_m), lambda i: (0, i)),   # lane-dense writeback
        ),
        compiler_params=pltpu.CompilerParams(
            dimension_semantics=("parallel",),
        ),
        cost_estimate=pl.CostEstimate(
            flops=flops, transcendentals=0, bytes_accessed=bytes_accessed),
    )
    return call(first, second, p["w1a"], p["w1b"], p["w1c"], p["b1"],
                p["w2"], p["b2"], p["w3"], p["b3"])


def pairwise_classifier_forward(first, second, prepared, *, tile_m=None):
    """first, second: (N, D) float32; prepared: output of prepare_params().

    Returns (N, 1) float32 (eval-mode forward).  If tile_m is given and does not cover
    all rows in a single tile, it must be a multiple of 128.
    """
    N, D = first.shape
    assert second.shape == (N, D)
    H = prepared["w1a"].shape[1]
    assert prepared["w1a"].shape == (D, H), "prepared params do not match input width"

    if N == 0:                               # no mention pairs this batch
        return jnp.zeros((0, 1), jnp.float32)

    if tile_m is None:
        tile_m = _pick_tile_m(N)
    num_tiles = int(pl.cdiv(N, tile_m))
    n_pad = num_tiles * tile_m               # only the tiny (1, n_pad) output is padded

    try:
        out_row = _build_and_run(first, second, prepared, tile_m=tile_m,
                                 num_tiles=num_tiles, n_pad=n_pad, d=D, h=H,
                                 single_buffered_weights=True)
    except Exception:
        # Some Pallas builds reject pl.Buffered(1) on pallas_call BlockSpecs; fall back
        # to default double-buffered weight blocks (extra VMEM only, identical results).
        out_row = _build_and_run(first, second, prepared, tile_m=tile_m,
                                 num_tiles=num_tiles, n_pad=n_pad, d=D, h=H,
                                 single_buffered_weights=False)

    # Drop padded columns, return (N, 1) like the PyTorch module.
    return out_row[0, :N].reshape(N, 1)


def init_params(key, input_layer, hidden_layer):
    """Deterministic synthetic init with PyTorch Linear weight shapes (out, in)."""
    ks = jax.random.split(key, 6)
    scale = 0.05
    return {
        "w1": scale * jax.random.normal(ks[0], (hidden_layer, input_layer), jnp.float32),
        "b1": scale * jax.random.normal(ks[1], (hidden_layer,), jnp.float32),
        "w2": scale * jax.random.normal(ks[2], (hidden_layer, hidden_layer), jnp.float32),
        "b2": scale * jax.random.normal(ks[3], (hidden_layer,), jnp.float32),
        "w3": scale * jax.random.normal(ks[4], (1, hidden_layer), jnp.float32),
        "b3": scale * jax.random.normal(ks[5], (1,), jnp.float32),
    }


def reference_forward(first, second, params):
    x = jnp.concatenate([first, second, first * second], axis=1)
    h1 = jnp.maximum(x @ params["w1"].T + params["b1"], 0.0)
    h2 = jnp.maximum(h1 @ params["w2"].T + params["b2"], 0.0)
    return h2 @ params["w3"].T + params["b3"]


if __name__ == "__main__":
    # Module config (small, consistent with __init__):
    bert_hidden_size = 32
    embedding_dimension = 16
    hidden_layer_size = 128
    use_mention_width = True
    use_head_attention = True

    per_mention = bert_hidden_size * 3 if use_head_attention else bert_hidden_size * 2
    if use_mention_width:
        per_mention += embedding_dimension       # D = 112
    input_layer = per_mention * 3                # 336
    N = 16                                       # number of mention pairs

    key = jax.random.PRNGKey(0)
    k_first, k_second, k_params = jax.random.split(key, 3)
    first = jax.random.normal(k_first, (N, per_mention), jnp.float32)
    second = jax.random.normal(k_second, (N, per_mention), jnp.float32)
    params = init_params(k_params, input_layer, hidden_layer_size)

    # One-time, out-of-hot-path weight layout/dtype prep (hoisted per perf review).
    prepared = prepare_params(params)

    out = pairwise_classifier_forward(first, second, prepared)
    out = jax.block_until_ready(out)

    ref = reference_forward(first, second, params)
    assert out.shape == (N, 1)
    # bf16 MXU operands with f32 accumulation -> looser tolerance than pure-f32.
    assert jnp.allclose(out, ref, atol=2e-2, rtol=2e-2), "mismatch vs pure-JAX reference"

    print("KERNEL_OK")
</pallas_src>

<mosaic_0001>
module attributes {stable_mosaic.version = 11 : i64} {
  func.func @_pairwise_mlp_kernel(%arg0: i32, %arg1: memref<16x112xf32, #tpu.memory_space<vmem>>, %arg2: memref<16x112xf32, #tpu.memory_space<vmem>>, %arg3: memref<112x128xbf16, #tpu.memory_space<vmem>>, %arg4: memref<112x128xbf16, #tpu.memory_space<vmem>>, %arg5: memref<112x128xbf16, #tpu.memory_space<vmem>>, %arg6: memref<1x128xf32, #tpu.memory_space<vmem>>, %arg7: memref<128x128xbf16, #tpu.memory_space<vmem>>, %arg8: memref<1x128xf32, #tpu.memory_space<vmem>>, %arg9: memref<1x128xbf16, #tpu.memory_space<vmem>>, %arg10: memref<1xf32, #tpu.memory_space<smem>>, %arg11: memref<1x16xf32, #tpu.memory_space<vmem>>) attributes {dimension_semantics = [#tpu.dimension_semantics<parallel>], iteration_bounds = array<i64: 1>, scalar_prefetch = 0 : i64, scratch_operands = 0 : i64, tpu.core_type = #tpu.core_type<tc>, window_params = [{transform_indices = @transform_0, window_bounds = array<i64: 16, 112>}, {transform_indices = @transform_1, window_bounds = array<i64: 16, 112>}, {pipeline_mode = #tpu.pipeline_mode<synchronous>, transform_indices = @transform_2, window_bounds = array<i64: 112, 128>}, {pipeline_mode = #tpu.pipeline_mode<synchronous>, transform_indices = @transform_3, window_bounds = array<i64: 112, 128>}, {pipeline_mode = #tpu.pipeline_mode<synchronous>, transform_indices = @transform_4, window_bounds = array<i64: 112, 128>}, {pipeline_mode = #tpu.pipeline_mode<synchronous>, transform_indices = @transform_5, window_bounds = array<i64: 1, 128>}, {pipeline_mode = #tpu.pipeline_mode<synchronous>, transform_indices = @transform_6, window_bounds = array<i64: 128, 128>}, {pipeline_mode = #tpu.pipeline_mode<synchronous>, transform_indices = @transform_7, window_bounds = array<i64: 1, 128>}, {pipeline_mode = #tpu.pipeline_mode<synchronous>, transform_indices = @transform_8, window_bounds = array<i64: 1, 128>}, {transform_indices = @transform_9, window_bounds = array<i64: 1>}, {transform_indices = @transform_10, window_bounds = array<i64: 1, 16>}]} {
    %c0 = arith.constant 0 : index
    %c0_0 = arith.constant 0 : index
    %0 = vector.load %arg1[%c0, %c0_0] : memref<16x112xf32, #tpu.memory_space<vmem>>, vector<16x112xf32>
    %c0_1 = arith.constant 0 : index
    %c0_2 = arith.constant 0 : index
    %1 = vector.load %arg2[%c0_1, %c0_2] : memref<16x112xf32, #tpu.memory_space<vmem>>, vector<16x112xf32>
    %2 = arith.mulf %0, %1 : vector<16x112xf32>
    %3 = arith.truncf %0 : vector<16x112xf32> to vector<16x112xbf16>
    %c0_3 = arith.constant 0 : index
    %c0_4 = arith.constant 0 : index
    %4 = vector.load %arg3[%c0_3, %c0_4] : memref<112x128xbf16, #tpu.memory_space<vmem>>, vector<112x128xbf16>
    %cst = arith.constant dense<0.000000e+00> : vector<16x128xf32>
    %5 = tpu.matmul %3, %4, %cst {dimension_numbers = #tpu.dot_dimension_numbers<[1], [0], [0], [1], [0, 0, 1, 1], [], []>} : vector<16x112xbf16>, vector<112x128xbf16>, vector<16x128xf32> -> vector<16x128xf32>
    %6 = arith.truncf %1 : vector<16x112xf32> to vector<16x112xbf16>
    %c0_5 = arith.constant 0 : index
    %c0_6 = arith.constant 0 : index
    %7 = vector.load %arg4[%c0_5, %c0_6] : memref<112x128xbf16, #tpu.memory_space<vmem>>, vector<112x128xbf16>
    %cst_7 = arith.constant dense<0.000000e+00> : vector<16x128xf32>
    %8 = tpu.matmul %6, %7, %cst_7 {dimension_numbers = #tpu.dot_dimension_numbers<[1], [0], [0], [1], [0, 0, 1, 1], [], []>} : vector<16x112xbf16>, vector<112x128xbf16>, vector<16x128xf32> -> vector<16x128xf32>
    %9 = arith.addf %5, %8 : vector<16x128xf32>
    %10 = arith.truncf %2 : vector<16x112xf32> to vector<16x112xbf16>
    %c0_8 = arith.constant 0 : index
    %c0_9 = arith.constant 0 : index
    %11 = vector.load %arg5[%c0_8, %c0_9] : memref<112x128xbf16, #tpu.memory_space<vmem>>, vector<112x128xbf16>
    %cst_10 = arith.constant dense<0.000000e+00> : vector<16x128xf32>
    %12 = tpu.matmul %10, %11, %cst_10 {dimension_numbers = #tpu.dot_dimension_numbers<[1], [0], [0], [1], [0, 0, 1, 1], [], []>} : vector<16x112xbf16>, vector<112x128xbf16>, vector<16x128xf32> -> vector<16x128xf32>
    %13 = arith.addf %9, %12 : vector<16x128xf32>
    %c0_11 = arith.constant 0 : index
    %c0_12 = arith.constant 0 : index
    %14 = vector.load %arg6[%c0_11, %c0_12] : memref<1x128xf32, #tpu.memory_space<vmem>>, vector<1x128xf32>
    %15 = vector.broadcast %14 : vector<1x128xf32> to vector<16x128xf32>
    %16 = arith.addf %13, %15 : vector<16x128xf32>
    %cst_13 = arith.constant 0.000000e+00 : f32
    %17 = vector.broadcast %cst_13 : f32 to vector<16x128xf32>
    %18 = arith.maximumf %16, %17 : vector<16x128xf32>
    %19 = arith.truncf %18 : vector<16x128xf32> to vector<16x128xbf16>
    %c0_14 = arith.constant 0 : index
    %c0_15 = arith.constant 0 : index
    %20 = vector.load %arg7[%c0_14, %c0_15] : memref<128x128xbf16, #tpu.memory_space<vmem>>, vector<128x128xbf16>
    %cst_16 = arith.constant dense<0.000000e+00> : vector<16x128xf32>
    %21 = tpu.matmul %19, %20, %cst_16 {dimension_numbers = #tpu.dot_dimension_numbers<[1], [0], [0], [1], [0, 0, 1, 1], [], []>} : vector<16x128xbf16>, vector<128x128xbf16>, vector<16x128xf32> -> vector<16x128xf32>
    %c0_17 = arith.constant 0 : index
    %c0_18 = arith.constant 0 : index
    %22 = vector.load %arg8[%c0_17, %c0_18] : memref<1x128xf32, #tpu.memory_space<vmem>>, vector<1x128xf32>
    %23 = vector.broadcast %22 : vector<1x128xf32> to vector<16x128xf32>
    %24 = arith.addf %21, %23 : vector<16x128xf32>
    %cst_19 = arith.constant 0.000000e+00 : f32
    %25 = vector.broadcast %cst_19 : f32 to vector<16x128xf32>
    %26 = arith.maximumf %24, %25 : vector<16x128xf32>
    %c0_20 = arith.constant 0 : index
    %c0_21 = arith.constant 0 : index
    %27 = vector.load %arg9[%c0_20, %c0_21] : memref<1x128xbf16, #tpu.memory_space<vmem>>, vector<1x128xbf16>
    %28 = arith.truncf %26 : vector<16x128xf32> to vector<16x128xbf16>
    %cst_22 = arith.constant dense<0.000000e+00> : vector<1x16xf32>
    %29 = tpu.matmul %27, %28, %cst_22 {dimension_numbers = #tpu.dot_dimension_numbers<[1], [1], [0], [0], [0, 0, 1, 0], [], []>} : vector<1x128xbf16>, vector<16x128xbf16>, vector<1x16xf32> -> vector<1x16xf32>
    %c0_23 = arith.constant 0 : index
    %30 = memref.load %arg10[%c0_23] : memref<1xf32, #tpu.memory_space<smem>>
    %31 = vector.broadcast %30 : f32 to vector<1x16xf32>
    %32 = arith.addf %29, %31 : vector<1x16xf32>
    %c0_24 = arith.constant 0 : index
    %c0_25 = arith.constant 0 : index
    %33 = vector.load %arg11[%c0_24, %c0_25] : memref<1x16xf32, #tpu.memory_space<vmem>>, vector<1x16xf32>
    tpu.vector_store %arg11[%c0_24, %c0_25], %32 {strides = array<i32>} : memref<1x16xf32, #tpu.memory_space<vmem>>, vector<1x16xf32>,
    return
  }
  func.func @transform_0(%arg0: i32) -> (i32, i32) {
    %c0_i32 = arith.constant 0 : i32
    %c0_i32_0 = arith.constant 0 : i32
    return %arg0, %c0_i32 : i32, i32
  }
  func.func @transform_1(%arg0: i32) -> (i32, i32) {
    %c0_i32 = arith.constant 0 : i32
    %c0_i32_0 = arith.constant 0 : i32
    return %arg0, %c0_i32 : i32, i32
  }
  func.func @transform_2(%arg0: i32) -> (i32, i32) {
    %c0_i32 = arith.constant 0 : i32
    %c0_i32_0 = arith.constant 0 : i32
    %c0_i32_1 = arith.constant 0 : i32
    return %c0_i32, %c0_i32_0 : i32, i32
  }
  func.func @transform_3(%arg0: i32) -> (i32, i32) {
    %c0_i32 = arith.constant 0 : i32
    %c0_i32_0 = arith.constant 0 : i32
    %c0_i32_1 = arith.constant 0 : i32
    return %c0_i32, %c0_i32_0 : i32, i32
  }
  func.func @transform_4(%arg0: i32) -> (i32, i32) {
    %c0_i32 = arith.constant 0 : i32
    %c0_i32_0 = arith.constant 0 : i32
    %c0_i32_1 = arith.constant 0 : i32
    return %c0_i32, %c0_i32_0 : i32, i32
  }
  func.func @transform_5(%arg0: i32) -> (i32, i32) {
    %c0_i32 = arith.constant 0 : i32
    %c0_i32_0 = arith.constant 0 : i32
    %c0_i32_1 = arith.constant 0 : i32
    return %c0_i32, %c0_i32_0 : i32, i32
  }
  func.func @transform_6(%arg0: i32) -> (i32, i32) {
    %c0_i32 = arith.constant 0 : i32
    %c0_i32_0 = arith.constant 0 : i32
    %c0_i32_1 = arith.constant 0 : i32
    return %c0_i32, %c0_i32_0 : i32, i32
  }
  func.func @transform_7(%arg0: i32) -> (i32, i32) {
    %c0_i32 = arith.constant 0 : i32
    %c0_i32_0 = arith.constant 0 : i32
    %c0_i32_1 = arith.constant 0 : i32
    return %c0_i32, %c0_i32_0 : i32, i32
  }
  func.func @transform_8(%arg0: i32) -> (i32, i32) {
    %c0_i32 = arith.constant 0 : i32
    %c0_i32_0 = arith.constant 0 : i32
    %c0_i32_1 = arith.constant 0 : i32
    return %c0_i32, %c0_i32_0 : i32, i32
  }
  func.func @transform_9(%arg0: i32) -> i32 {
    %c0_i32 = arith.constant 0 : i32
    %c0_i32_0 = arith.constant 0 : i32
    return %c0_i32 : i32
  }
  func.func @transform_10(%arg0: i32) -> (i32, i32) {
    %c0_i32 = arith.constant 0 : i32
    %c0_i32_0 = arith.constant 0 : i32
    return %c0_i32, %arg0 : i32, i32
  }
}

module attributes {stable_mosaic.version = 11 : i64} {
  func.func @_pairwise_mlp_kernel(%arg0: i32, %arg1: memref<16x112xf32, #tpu.memory_space<vmem>>, %arg2: memref<16x112xf32, #tpu.memory_space<vmem>>, %arg3: memref<112x128xbf16, #tpu.memory_space<vmem>>, %arg4: memref<112x128xbf16, #tpu.memory_space<vmem>>, %arg5: memref<112x128xbf16, #tpu.memory_space<vmem>>, %arg6: memref<1x128xf32, #tpu.memory_space<vmem>>, %arg7: memref<128x128xbf16, #tpu.memory_space<vmem>>, %arg8: memref<1x128xf32, #tpu.memory_space<vmem>>, %arg9: memref<1x128xbf16, #tpu.memory_space<vmem>>, %arg10: memref<1xf32, #tpu.memory_space<smem>>, %arg11: memref<1x16xf32, #tpu.memory_space<vmem>>) attributes {dimension_semantics = [#tpu.dimension_semantics<parallel>], iteration_bounds = array<i64: 1>, scalar_prefetch = 0 : i64, scratch_operands = 0 : i64, tpu.core_type = #tpu.core_type<tc>, window_params = [{transform_indices = @transform_0, window_bounds = array<i64: 16, 112>}, {transform_indices = @transform_1, window_bounds = array<i64: 16, 112>}, {pipeline_mode = #tpu.pipeline_mode<synchronous>, transform_indices = @transform_2, window_bounds = array<i64: 112, 128>}, {pipeline_mode = #tpu.pipeline_mode<synchronous>, transform_indices = @transform_3, window_bounds = array<i64: 112, 128>}, {pipeline_mode = #tpu.pipeline_mode<synchronous>, transform_indices = @transform_4, window_bounds = array<i64: 112, 128>}, {pipeline_mode = #tpu.pipeline_mode<synchronous>, transform_indices = @transform_5, window_bounds = array<i64: 1, 128>}, {pipeline_mode = #tpu.pipeline_mode<synchronous>, transform_indices = @transform_6, window_bounds = array<i64: 128, 128>}, {pipeline_mode = #tpu.pipeline_mode<synchronous>, transform_indices = @transform_7, window_bounds = array<i64: 1, 128>}, {pipeline_mode = #tpu.pipeline_mode<synchronous>, transform_indices = @transform_8, window_bounds = array<i64: 1, 128>}, {transform_indices = @transform_9, window_bounds = array<i64: 1>}, {transform_indices = @transform_10, window_bounds = array<i64: 1, 16>}]} {
    %c0 = arith.constant 0 : index
    %c0_0 = arith.constant 0 : index
    %0 = vector.load %arg1[%c0, %c0_0] : memref<16x112xf32, #tpu.memory_space<vmem>>, vector<16x112xf32>
    %c0_1 = arith.constant 0 : index
    %c0_2 = arith.constant 0 : index
    %1 = vector.load %arg2[%c0_1, %c0_2] : memref<16x112xf32, #tpu.memory_space<vmem>>, vector<16x112xf32>
    %2 = arith.mulf %0, %1 : vector<16x112xf32>
    %3 = arith.truncf %0 : vector<16x112xf32> to vector<16x112xbf16>
    %c0_3 = arith.constant 0 : index
    %c0_4 = arith.constant 0 : index
    %4 = vector.load %arg3[%c0_3, %c0_4] : memref<112x128xbf16, #tpu.memory_space<vmem>>, vector<112x128xbf16>
    %cst = arith.constant dense<0.000000e+00> : vector<16x128xf32>
    %5 = tpu.matmul %3, %4, %cst {dimension_numbers = #tpu.dot_dimension_numbers<[1], [0], [0], [1], [0, 0, 1, 1], [], []>} : vector<16x112xbf16>, vector<112x128xbf16>, vector<16x128xf32> -> vector<16x128xf32>
    %6 = arith.truncf %1 : vector<16x112xf32> to vector<16x112xbf16>
    %c0_5 = arith.constant 0 : index
    %c0_6 = arith.constant 0 : index
    %7 = vector.load %arg4[%c0_5, %c0_6] : memref<112x128xbf16, #tpu.memory_space<vmem>>, vector<112x128xbf16>
    %cst_7 = arith.constant dense<0.000000e+00> : vector<16x128xf32>
    %8 = tpu.matmul %6, %7, %cst_7 {dimension_numbers = #tpu.dot_dimension_numbers<[1], [0], [0], [1], [0, 0, 1, 1], [], []>} : vector<16x112xbf16>, vector<112x128xbf16>, vector<16x128xf32> -> vector<16x128xf32>
    %9 = arith.addf %5, %8 : vector<16x128xf32>
    %10 = arith.truncf %2 : vector<16x112xf32> to vector<16x112xbf16>
    %c0_8 = arith.constant 0 : index
    %c0_9 = arith.constant 0 : index
    %11 = vector.load %arg5[%c0_8, %c0_9] : memref<112x128xbf16, #tpu.memory_space<vmem>>, vector<112x128xbf16>
    %cst_10 = arith.constant dense<0.000000e+00> : vector<16x128xf32>
    %12 = tpu.matmul %10, %11, %cst_10 {dimension_numbers = #tpu.dot_dimension_numbers<[1], [0], [0], [1], [0, 0, 1, 1], [], []>} : vector<16x112xbf16>, vector<112x128xbf16>, vector<16x128xf32> -> vector<16x128xf32>
    %13 = arith.addf %9, %12 : vector<16x128xf32>
    %c0_11 = arith.constant 0 : index
    %c0_12 = arith.constant 0 : index
    %14 = vector.load %arg6[%c0_11, %c0_12] : memref<1x128xf32, #tpu.memory_space<vmem>>, vector<1x128xf32>
    %15 = vector.broadcast %14 : vector<1x128xf32> to vector<16x128xf32>
    %16 = arith.addf %13, %15 : vector<16x128xf32>
    %cst_13 = arith.constant 0.000000e+00 : f32
    %17 = vector.broadcast %cst_13 : f32 to vector<16x128xf32>
    %18 = arith.maximumf %16, %17 : vector<16x128xf32>
    %19 = arith.truncf %18 : vector<16x128xf32> to vector<16x128xbf16>
    %c0_14 = arith.constant 0 : index
    %c0_15 = arith.constant 0 : index
    %20 = vector.load %arg7[%c0_14, %c0_15] : memref<128x128xbf16, #tpu.memory_space<vmem>>, vector<128x128xbf16>
    %cst_16 = arith.constant dense<0.000000e+00> : vector<16x128xf32>
    %21 = tpu.matmul %19, %20, %cst_16 {dimension_numbers = #tpu.dot_dimension_numbers<[1], [0], [0], [1], [0, 0, 1, 1], [], []>} : vector<16x128xbf16>, vector<128x128xbf16>, vector<16x128xf32> -> vector<16x128xf32>
    %c0_17 = arith.constant 0 : index
    %c0_18 = arith.constant 0 : index
    %22 = vector.load %arg8[%c0_17, %c0_18] : memref<1x128xf32, #tpu.memory_space<vmem>>, vector<1x128xf32>
    %23 = vector.broadcast %22 : vector<1x128xf32> to vector<16x128xf32>
    %24 = arith.addf %21, %23 : vector<16x128xf32>
    %cst_19 = arith.constant 0.000000e+00 : f32
    %25 = vector.broadcast %cst_19 : f32 to vector<16x128xf32>
    %26 = arith.maximumf %24, %25 : vector<16x128xf32>
    %c0_20 = arith.constant 0 : index
    %c0_21 = arith.constant 0 : index
    %27 = vector.load %arg9[%c0_20, %c0_21] : memref<1x128xbf16, #tpu.memory_space<vmem>>, vector<1x128xbf16>
    %28 = arith.truncf %26 : vector<16x128xf32> to vector<16x128xbf16>
    %cst_22 = arith.constant dense<0.000000e+00> : vector<1x16xf32>
    %29 = tpu.matmul %27, %28, %cst_22 {dimension_numbers = #tpu.dot_dimension_numbers<[1], [1], [0], [0], [0, 0, 1, 0], [], []>} : vector<1x128xbf16>, vector<16x128xbf16>, vector<1x16xf32> -> vector<1x16xf32>
    %c0_23 = arith.constant 0 : index
    %30 = memref.load %arg10[%c0_23] : memref<1xf32, #tpu.memory_space<smem>>
    %31 = vector.broadcast %30 : f32 to vector<1x16xf32>
    %32 = arith.addf %29, %31 : vector<1x16xf32>
    %c0_24 = arith.constant 0 : index
    %c0_25 = arith.constant 0 : index
    %33 = vector.load %arg11[%c0_24, %c0_25] : memref<1x16xf32, #tpu.memory_space<vmem>>, vector<1x16xf32>
    tpu.vector_store %arg11[%c0_24, %c0_25], %32 {strides = array<i32>} : memref<1x16xf32, #tpu.memory_space<vmem>>, vector<1x16xf32>,
    return
  }
  func.func @transform_0(%arg0: i32) -> (i32, i32) {
    %c0_i32 = arith.constant 0 : i32
    %c0_i32_0 = arith.constant 0 : i32
    return %arg0, %c0_i32 : i32, i32
  }
  func.func @transform_1(%arg0: i32) -> (i32, i32) {
    %c0_i32 = arith.constant 0 : i32
    %c0_i32_0 = arith.constant 0 : i32
    return %arg0, %c0_i32 : i32, i32
  }
  func.func @transform_2(%arg0: i32) -> (i32, i32) {
    %c0_i32 = arith.constant 0 : i32
    %c0_i32_0 = arith.constant 0 : i32
    %c0_i32_1 = arith.constant 0 : i32
    return %c0_i32, %c0_i32_0 : i32, i32
  }
  func.func @transform_3(%arg0: i32) -> (i32, i32) {
    %c0_i32 = arith.constant 0 : i32
    %c0_i32_0 = arith.constant 0 : i32
    %c0_i32_1 = arith.constant 0 : i32
    return %c0_i32, %c0_i32_0 : i32, i32
  }
  func.func @transform_4(%arg0: i32) -> (i32, i32) {
    %c0_i32 = arith.constant 0 : i32
    %c0_i32_0 = arith.constant 0 : i32
    %c0_i32_1 = arith.constant 0 : i32
    return %c0_i32, %c0_i32_0 : i32, i32
  }
  func.func @transform_5(%arg0: i32) -> (i32, i32) {
    %c0_i32 = arith.constant 0 : i32
    %c0_i32_0 = arith.constant 0 : i32
    %c0_i32_1 = arith.constant 0 : i32
    return %c0_i32, %c0_i32_0 : i32, i32
  }
  func.func @transform_6(%arg0: i32) -> (i32, i32) {
    %c0_i32 = arith.constant 0 : i32
    %c0_i32_0 = arith.constant 0 : i32
    %c0_i32_1 = arith.constant 0 : i32
    return %c0_i32, %c0_i32_0 : i32, i32
  }
  func.func @transform_7(%arg0: i32) -> (i32, i32) {
    %c0_i32 = arith.constant 0 : i32
    %c0_i32_0 = arith.constant 0 : i32
    %c0_i32_1 = arith.constant 0 : i32
    return %c0_i32, %c0_i32_0 : i32, i32
  }
  func.func @transform_8(%arg0: i32) -> (i32, i32) {
    %c0_i32 = arith.constant 0 : i32
    %c0_i32_0 = arith.constant 0 : i32
    %c0_i32_1 = arith.constant 0 : i32
    return %c0_i32, %c0_i32_0 : i32, i32
  }
  func.func @transform_9(%arg0: i32) -> i32 {
    %c0_i32 = arith.constant 0 : i32
    %c0_i32_0 = arith.constant 0 : i32
    return %c0_i32 : i32
  }
  func.func @transform_10(%arg0: i32) -> (i32, i32) {
    %c0_i32 = arith.constant 0 : i32
    %c0_i32_0 = arith.constant 0 : i32
    return %c0_i32, %arg0 : i32, i32
  }
}

</mosaic_0001>

<bundles_post_ra>
// kernel: tpu_custom_call.1
= control target key start
LH: loop header
LB: loop body
LE: loop exit
PB: predicated region body
PF: predicated region fallthrough
CT: control target
= control target key end

     0   :  { %16 = vsyncpa [#allocation4], 0  ;;  %s1202_s0 = inlined_call_operand.hbm [shape: f32[16,112], index: 0, kind: input, shape index: {}]   ;;  %s1203_s1 = inlined_call_operand.hbm [shape: f32[16,112], index: 1, kind: input, shape index: {}]   ;;  %s1204_s2 = inlined_call_operand.hbm [shape: bf16[112,128], index: 2, kind: input, shape index: {}]   ;;  %s1205_s3 = inlined_call_operand.hbm [shape: bf16[112,128], index: 3, kind: input, shape index: {}]   ;;  %s1206_s4 = inlined_call_operand.hbm [shape: bf16[112,128], index: 4, kind: input, shape index: {}]   ;;  %s1207_s5 = inlined_call_operand.vmem [shape: f32[1,128], index: 5, kind: input, shape index: {}]   ;;  %s1208_s6 = inlined_call_operand.hbm [shape: bf16[128,128], index: 6, kind: input, shape index: {}]   ;;  %s1209_s7 = inlined_call_operand.vmem [shape: f32[1,128], index: 7, kind: input, shape index: {}]   ;;  %s1210_s8 = inlined_call_operand.vmem [shape: bf16[1,128], index: 8, kind: input, shape index: {}]   ;;  %s1211_s9 = inlined_call_operand.<no memory space> [shape: f32[1], index: 9, kind: input, shape index: {}]   ;;  %s1212_s10 = inlined_call_operand.hbm [shape: f32[1,16], index: 10, kind: output, shape index: {}]  }
   0x1   :  { %17 = vsyncpa [#allocation7], 0 }
   0x2   :  { %18 = vsyncpa [#allocation10], 0 }
   0x3   :  { %19 = vsyncpa [#allocation13], 0 }
   0x4   :  { %20 = vsyncpa [#allocation5], 0  ;;  %s977_s13 = smov [#allocation6]   ;;  %s813_s17 = scalar_lea.hbm %s1203_s1, 256 }
   0x5   :  { %s38_s14 = sshll.u32 %s977_s13, 4  ;;  %p814_p0 = scmp.ne.s32.totalorder %s1203_s1, %s813_s17  ;;  %s39_s14 = int_to_ptr.vmem [resolvable:$true] %s38_s14 }
   0x6   :  { %p817_p1 = scmp.lt.u32.totalorder %s813_s17, %s1203_s1 }
   0x8   :  { %p819_p2 = pnand %p817_p1, %p814_p0 }
   0xa   :  { %822 = shalt.err (!%p819_p2)
}
   0xb   :  { %s823_s22 = scalar_lea.vmem %s39_s14, 256  ;;  %p828_p4 = scmp.lt.s32.totalorder %s39_s14, %s39_s14 }
   0xc   :  { %p824_p3 = scmp.ne.s32.totalorder %s39_s14, %s823_s22  ;;  %p829_p5 = scmp.lt.s32.totalorder %s823_s22, %s823_s22 }
   0xe   :  { %p830_p6 = por %p829_p5, %p828_p4 }
  0x10   :  { %p831_p7 = pnand %p830_p6, %p824_p3 }
  0x12   :  { %834 = shalt.err (!%p831_p7)
}
  0x13   :  { %s978_s23 = smov 128   ;;  %s979_s24 = smov 8  }
  0x14   :  { %44 = dma.hbm_to_vmem [thread:$0]  %s1203_s1, 256, %s39_s14, [#allocation7], %s978_s23, %s978_s23, %s979_s24  }
  0x15   :  { %s980_s27 = smov [#allocation9]   ;;  %s981_s29 = smov [#allocation3]  }
  0x16   :  { %s62_s28 = sshll.u32 %s980_s27, 4  ;;  %s26_s30 = sshll.u32 %s981_s29, 4  ;;  %s63_s28 = int_to_ptr.vmem [resolvable:$true] %s62_s28  ;;  %s27_s30 = int_to_ptr.vmem [resolvable:$true] %s26_s30 }
  0x17   :  { %s835_s13 = scalar_lea.hbm %s1205_s3, 896 }
  0x18   :  { %p836_p8 = scmp.ne.s32.totalorder %s1205_s3, %s835_s13  ;;  %p839_p9 = scmp.lt.u32.totalorder %s835_s13, %s1205_s3 }
  0x1a   :  { %p841_p10 = pnand %p839_p9, %p836_p8 }
  0x1c   :  { %844 = shalt.err (!%p841_p10)
}
  0x1d   :  { %s845_s1 = scalar_lea.vmem %s63_s28, 896  ;;  %p850_p12 = scmp.lt.s32.totalorder %s63_s28, %s63_s28 }
  0x1e   :  { %p846_p11 = scmp.ne.s32.totalorder %s63_s28, %s845_s1  ;;  %p851_p13 = scmp.lt.s32.totalorder %s845_s1, %s845_s1 }
  0x20   :  { %p852_p0 = por %p851_p13, %p850_p12 }
  0x22   :  { %p853_p1 = pnand %p852_p0, %p846_p11 }
  0x24   :  { %856 = shalt.err (!%p853_p1)
}
  0x25   :  { %s982_s14 = smov 64   ;;  %s983_s19 = smov 4  }
  0x26   :  { %68 = dma.hbm_to_vmem [thread:$0]  %s1205_s3, 896, %s63_s28, [#allocation10], %s982_s14, %s982_s14, %s983_s19  }
  0x27   :  { %s857_s26 = scalar_lea.hbm %s1202_s0, 256 }
  0x28   :  { %p858_p2 = scmp.ne.s32.totalorder %s1202_s0, %s857_s26  ;;  %p861_p3 = scmp.lt.u32.totalorder %s857_s26, %s1202_s0 }
  0x2a   :  { %p863_p4 = pnand %p861_p3, %p858_p2 }
  0x2c   :  { %866 = shalt.err (!%p863_p4)
}
  0x2d   :  { %s867_s13 = scalar_lea.vmem %s27_s30, 256  ;;  %p872_p6 = scmp.lt.s32.totalorder %s27_s30, %s27_s30 }
  0x2e   :  { %p868_p5 = scmp.ne.s32.totalorder %s27_s30, %s867_s13  ;;  %p873_p7 = scmp.lt.s32.totalorder %s867_s13, %s867_s13 }
  0x30   :  { %p874_p8 = por %p873_p7, %p872_p6 }
  0x32   :  { %p875_p9 = pnand %p874_p8, %p868_p5 }
  0x34   :  { %878 = shalt.err (!%p875_p9)
}
  0x35   :  { %32 = dma.hbm_to_vmem [thread:$0]  %s1202_s0, 256, %s27_s30, [#allocation4], %s978_s23, %s978_s23, %s979_s24  }
  0x36   :  { %s984_s15 = smov [#allocation8]   ;;  %s985_s17 = smov [#allocation11]  }
  0x37   :  { %s50_s16 = sshll.u32 %s984_s15, 4  ;;  %s74_s18 = sshll.u32 %s985_s17, 4  ;;  %s51_s16 = int_to_ptr.vmem [resolvable:$true] %s50_s16  ;;  %s75_s18 = int_to_ptr.vmem [resolvable:$true] %s74_s18 }
  0x38   :  { %s879_s21 = scalar_lea.hbm %s1204_s2, 896 }
  0x39   :  { %p880_p10 = scmp.ne.s32.totalorder %s1204_s2, %s879_s21  ;;  %p883_p11 = scmp.lt.u32.totalorder %s879_s21, %s1204_s2 }
  0x3b   :  { %p885_p12 = pnand %p883_p11, %p880_p10 }
  0x3d   :  { %888 = shalt.err (!%p885_p12)
}
  0x3e   :  { %s889_s0 = scalar_lea.vmem %s51_s16, 896  ;;  %p894_p0 = scmp.lt.s32.totalorder %s51_s16, %s51_s16 }
  0x3f   :  { %p890_p13 = scmp.ne.s32.totalorder %s51_s16, %s889_s0  ;;  %p895_p1 = scmp.lt.s32.totalorder %s889_s0, %s889_s0 }
  0x41   :  { %p896_p2 = por %p895_p1, %p894_p0 }
  0x43   :  { %p897_p3 = pnand %p896_p2, %p890_p13 }
  0x45   :  { %900 = shalt.err (!%p897_p3)
}
  0x46   :  { %56 = dma.hbm_to_vmem [thread:$0]  %s1204_s2, 896, %s51_s16, [#allocation7], %s982_s14, %s982_s14, %s983_s19  }
  0x47   :  { %s901_s11 = scalar_lea.hbm %s1206_s4, 896 }
  0x48   :  { %p902_p4 = scmp.ne.s32.totalorder %s1206_s4, %s901_s11  ;;  %p905_p5 = scmp.lt.u32.totalorder %s901_s11, %s1206_s4 }
  0x4a   :  { %p907_p6 = pnand %p905_p5, %p902_p4 }
  0x4c   :  { %910 = shalt.err (!%p907_p6)
}
  0x4d   :  { %s911_s15 = scalar_lea.vmem %s75_s18, 896  ;;  %p916_p8 = scmp.lt.s32.totalorder %s75_s18, %s75_s18 }
  0x4e   :  { %p912_p7 = scmp.ne.s32.totalorder %s75_s18, %s911_s15  ;;  %p917_p9 = scmp.lt.s32.totalorder %s911_s15, %s911_s15 }
  0x50   :  { %p918_p10 = por %p917_p9, %p916_p8 }
  0x52   :  { %p919_p11 = pnand %p918_p10, %p912_p7 }
  0x54   :  { %922 = shalt.err (!%p919_p11)
}
  0x55   :  { %80 = dma.hbm_to_vmem [thread:$0]  %s1206_s4, 896, %s75_s18, [#allocation10], %s982_s14, %s982_s14, %s983_s19  }
  0x56   :  { %s986_s17 = smov [#allocation12]   ;;  %s923_s22 = scalar_lea.hbm %s1208_s6, 1024 }
  0x57   :  { %s88_s1 = sshll.u32 %s986_s17, 4  ;;  %p924_p12 = scmp.ne.s32.totalorder %s1208_s6, %s923_s22  ;;  %s89_s1 = int_to_ptr.vmem [resolvable:$true] %s88_s1 }
  0x58   :  { %p927_p13 = scmp.lt.u32.totalorder %s923_s22, %s1208_s6 }
  0x5a   :  { %p929_p0 = pnand %p927_p13, %p924_p12 }
  0x5c   :  { %932 = shalt.err (!%p929_p0)
}
  0x5d   :  { %s933_s23 = scalar_lea.vmem %s89_s1, 1024  ;;  %p938_p2 = scmp.lt.s32.totalorder %s89_s1, %s89_s1 }
  0x5e   :  { %p934_p1 = scmp.ne.s32.totalorder %s89_s1, %s933_s23  ;;  %p939_p3 = scmp.lt.s32.totalorder %s933_s23, %s933_s23 }
  0x60   :  { %p940_p4 = por %p939_p3, %p938_p2 }
  0x62   :  { %p941_p5 = pnand %p940_p4, %p934_p1 }
  0x64   :  { %944 = shalt.err (!%p941_p5)
}
  0x65   :  { %94 = dma.hbm_to_vmem [thread:$0]  %s1208_s6, 1024, %s89_s1, [#allocation13], %s982_s14, %s982_s14, %s983_s19  }
  0x66   :  { %967 = dma.done.wait [#allocation4], 256  }
  0x67   :  { %968 = vsyncadd [#allocation4], 4294967040 }
  0x68   :  { %969 = dma.done.wait [#allocation7], 1152  }
  0x69   :  { %970 = vsyncadd [#allocation7], 4294966144 }
  0x6a   :  { %971 = dma.done.wait [#allocation10], 1792  }
  0x6b   :  { %972 = vsyncadd [#allocation10], 4294965504 }
  0x6c   :  { %973 = dma.done.wait [#allocation13], 1024  }
  0x6d   :  { %974 = vsyncadd [#allocation13], 4294966272  ;;  %v987_v0 = vmov 0.0   ;;  %vm988_vm0 = vmmov 0   ;;  %v784_v1 = vld [vmem:[#allocation9] sm:$0xff]   ;;  %v785_v2 = vld [vmem:[#allocation8] sm:$0xff]  }
  0x6e   :  { %691 = vmatprep.subr.bf16.mxu0 %v987_v0  ;;  %709 = vmatprep.subr.bf16.mxu1 %v987_v0  ;;  %v786_v3 = vld [vmem:[#allocation9 + $0x8] sm:$0xff]   ;;  %v787_v4 = vld [vmem:[#allocation8 + $0x8] sm:$0xff]   ;;  %v789_v6 = vld [vmem:[#allocation8 + $0x10] sm:$0xff]   ;;  %vm198_vm1 = vcmask 916480   ;;  %vm602_vm2 = vcmask 122880  }
  0x6f   :  { %705 = vmatprep.mubr.msk.bf16.mxu0 %vm988_vm0, %v987_v0  ;;  %723 = vmatprep.mubr.msk.bf16.mxu1 %vm988_vm0, %v987_v0  ;;  %v788_v5 = vld [vmem:[#allocation9 + $0x10] sm:$0xff]   ;;  %v790_v7 = vld [vmem:[#allocation9 + $0x18] sm:$0xff]   ;;  %v791_v8 = vld [vmem:[#allocation8 + $0x18] sm:$0xff]  }
  0x70   :  { %692 = vmatpush3.bf16.msra.mxu0 %v784_v1  ;;  %710 = vmatpush3.bf16.msra.mxu1 %v785_v2  ;;  %v792_v9 = vld [vmem:[#allocation9 + $0x20] sm:$0xff]   ;;  %v793_v10 = vld [vmem:[#allocation8 + $0x20] sm:$0xff]   ;;  %v795_v12 = vld [vmem:[#allocation8 + $0x28] sm:$0xff]  }
  0x71   :  { %693 = vmatprep.subr.bf16.mxu0 %v987_v0  ;;  %711 = vmatprep.subr.bf16.mxu1 %v987_v0  ;;  %v794_v11 = vld [vmem:[#allocation9 + $0x28] sm:$0xff]   ;;  %v796_v13 = vld [vmem:[#allocation9 + $0x30] sm:$0xff]   ;;  %v122_v14 = vld [vmem:[#allocation6] sm:$0xff] }
  0x72   :  { %v123_v15 = vld [vmem:[#allocation6 + $0x8] sm:$0xff]  ;;  %v797_v16 = vld [vmem:[#allocation8 + $0x30] sm:$0xff]   ;;  %v120_v17 = vld [vmem:[#allocation3] sm:$0xff] }
  0x73   :  { %v121_v18 = vld [vmem:[#allocation3 + $0x8] sm:$0xff]  ;;  %v798_v19 = vld [vmem:[#allocation11] sm:$0xff]   ;;  %v141_v20 = vpack.c.bf16 %v123_v15, %v122_v14  ;;  %v799_v22 = vld [vmem:[#allocation11 + $0x8] sm:$0xff]   ;;  %v124_v27 = vmul.f32 %v122_v14, %v120_v17 }
  0x74   :  { %694 = vmatpush3.bf16.msra.mxu0 %v786_v3  ;;  %712 = vmatpush3.bf16.msra.mxu1 %v787_v4  ;;  %v126_v21 = vpack.c.bf16 %v121_v18, %v120_v17  ;;  %v800_v23 = vld [vmem:[#allocation11 + $0x10] sm:$0xff]   ;;  %v801_v24 = vld [vmem:[#allocation11 + $0x18] sm:$0xff]   ;;  %v802_v25 = vld [vmem:[#allocation11 + $0x20] sm:$0xff]   ;;  %v125_v28 = vmul.f32 %v123_v15, %v121_v18 }
  0x75   :  { %695 = vmatprep.subr.bf16.mxu0 %v987_v0  ;;  %713 = vmatprep.subr.bf16.mxu1 %v987_v0  ;;  %v803_v26 = vld [vmem:[#allocation11 + $0x28] sm:$0xff]   ;;  %v804_v29 = vld [vmem:[#allocation11 + $0x30] sm:$0xff]   ;;  %v805_v31 = vld [vmem:[#allocation12] sm:$0xff]  }
  0x76   :  { %v329_v30 = vpack.c.bf16 %v125_v28, %v124_v27  ;;  %v806_v32 = vld [vmem:[#allocation12 + $0x8] sm:$0xff]   ;;  %v807_v33 = vld [vmem:[#allocation12 + $0x10] sm:$0xff]   ;;  %v808_v34 = vld [vmem:[#allocation12 + $0x18] sm:$0xff]  }
  0x77   :  { %v809_v35 = vld [vmem:[#allocation12 + $0x20] sm:$0xff]   ;;  %v810_v36 = vld [vmem:[#allocation12 + $0x28] sm:$0xff]   ;;  %v811_v37 = vld [vmem:[#allocation12 + $0x30] sm:$0xff]  }
  0x78   :  { %696 = vmatpush3.bf16.msra.mxu0 %v788_v5  ;;  %714 = vmatpush3.bf16.msra.mxu1 %v789_v6  ;;  %v812_v38 = vld [vmem:[#allocation12 + $0x38] sm:$0xff]  }
  0x79   :  { %697 = vmatprep.subr.bf16.mxu0 %v987_v0  ;;  %715 = vmatprep.subr.bf16.mxu1 %v987_v0  ;;  %v646_v50 = vld [vmem:[%s1207_s5] ss:$0 sm:$0xff] }
  0x7a   :  { %v647_v61 = vld [vmem:[%s1209_s7] ss:$0 sm:$0xff]  ;;  %s989_s7 = smov [#allocation14]  }
  0x7b   :  { %s610_s12 = sshll.u32 %s989_s7, 4  ;;  %s611_s12 = int_to_ptr.vmem [resolvable:$true] %s610_s12 }
  0x7c   :  { %698 = vmatpush3.bf16.msra.mxu0 %v790_v7  ;;  %716 = vmatpush3.bf16.msra.mxu1 %v791_v8  ;;  %v558_v7 = vld [vmem:[%s1210_s8] sm:$0x1]  ;;  %v561_v8 = vstv %s1211_s9  ;;  %s945_s13 = scalar_lea.vmem %s611_s12, 16  ;;  %s949_s3 = scalar_lea.vmem %s611_s12, 32 }
  0x7d   :  { %699 = vmatprep.subr.bf16.mxu0 %v987_v0  ;;  %717 = vmatprep.subr.bf16.mxu1 %v987_v0  ;;  %p946_p6 = scmp.ne.s32.totalorder %s611_s12, %s945_s13  ;;  %p950_p7 = scmp.lt.s32.totalorder %s611_s12, %s611_s12 }
  0x7e   :  { %p951_p8 = scmp.lt.s32.totalorder %s949_s3, %s945_s13 }
  0x80   :  { %700 = vmatpush3.bf16.msra.mxu0 %v792_v9  ;;  %718 = vmatpush3.bf16.msra.mxu1 %v793_v10  ;;  %p952_p9 = por %p951_p8, %p950_p7 }
  0x81   :  { %701 = vmatprep.subr.bf16.mxu0 %v987_v0  ;;  %719 = vmatprep.subr.bf16.mxu1 %v987_v0 }
  0x82   :  { %p953_p10 = pnand %p952_p9, %p946_p6 }
  0x84   :  { %702 = vmatpush3.bf16.msra.mxu0 %v794_v11  ;;  %720 = vmatpush3.bf16.msra.mxu1 %v795_v12 }
  0x85   :  { %703 = vmatprep.subr.bf16.mxu0 %v987_v0  ;;  %721 = vmatprep.subr.bf16.mxu1 %v987_v0 }
  0x88   :  { %704 = vmatpush3.bf16.msra.mxu0 %v796_v13  ;;  %722 = vmatpush3.bf16.msra.mxu1 %v797_v16 }
  0x89   :  { %727 = vmatprep.subr.bf16.mxu0 %v987_v0  ;;  %745 = vmatprep.subr.bf16.mxu1 %v987_v0 }
  0x8b   :  { %706 = vmatmul.mubr.msk.bf16.vlgmr.msra.gmra.mrb[0].mxu0 %vm198_vm1, %v141_v20  ;;  %724 = vmatmul.mubr.msk.bf16.vlgmr.msra.gmra.mrb[0].mxu1 %vm198_vm1, %v126_v21 }
  0x8c   :  { %728 = vmatpush3.bf16.msra.mxu0 %v798_v19  ;;  %741 = vmatprep.mubr.msk.bf16.mxu0 %vm988_vm0, %v987_v0 }
  0x8d   :  { %729 = vmatprep.subr.bf16.mxu0 %v987_v0  ;;  %761 = vmatprep.mubr.msk.bf16.mxu1 %vm988_vm0, %v987_v0 }
  0x8e   :  { %746 = vmatpush3.bf16.msra.mxu1 %v805_v31 }
  0x8f   :  { %747 = vmatprep.subr.bf16.mxu1 %v987_v0 }
  0x90   :  { %730 = vmatpush3.bf16.msra.mxu0 %v799_v22 }
  0x91   :  { %731 = vmatprep.subr.bf16.mxu0 %v987_v0 }
  0x92   :  { %748 = vmatpush3.bf16.msra.mxu1 %v806_v32 }
  0x93   :  { %749 = vmatprep.subr.bf16.mxu1 %v987_v0 }
  0x94   :  { %732 = vmatpush3.bf16.msra.mxu0 %v800_v23 }
  0x95   :  { %733 = vmatprep.subr.bf16.mxu0 %v987_v0 }
  0x96   :  { %750 = vmatpush3.bf16.msra.mxu1 %v807_v33 }
  0x97   :  { %751 = vmatprep.subr.bf16.mxu1 %v987_v0 }
  0x98   :  { %734 = vmatpush3.bf16.msra.mxu0 %v801_v24 }
  0x99   :  { %735 = vmatprep.subr.bf16.mxu0 %v987_v0 }
  0x9a   :  { %752 = vmatpush3.bf16.msra.mxu1 %v808_v34 }
  0x9b   :  { %753 = vmatprep.subr.bf16.mxu1 %v987_v0 }
  0x9c   :  { %736 = vmatpush3.bf16.msra.mxu0 %v802_v25 }
  0x9d   :  { %737 = vmatprep.subr.bf16.mxu0 %v987_v0 }
  0x9e   :  { %754 = vmatpush3.bf16.msra.mxu1 %v809_v35 }
  0x9f   :  { %755 = vmatprep.subr.bf16.mxu1 %v987_v0 }
  0xa0   :  { %738 = vmatpush3.bf16.msra.mxu0 %v803_v26 }
  0xa1   :  { %739 = vmatprep.subr.bf16.mxu0 %v987_v0 }
  0xa2   :  { %756 = vmatpush3.bf16.msra.mxu1 %v810_v36 }
  0xa3   :  { %757 = vmatprep.subr.bf16.mxu1 %v987_v0 }
  0xa4   :  { %740 = vmatpush3.bf16.msra.mxu0 %v804_v29 }
  0xa5   :  { %765 = vmatprep.subr.bf16.mxu0 %v987_v0 }
  0xa6   :  { %758 = vmatpush3.bf16.msra.mxu1 %v811_v37 }
  0xa7   :  { %742 = vmatmul.mubr.msk.bf16.vlgmr.msra.gmra.mrb[4].mxu0 %vm198_vm1, %v329_v30  ;;  %759 = vmatprep.subr.bf16.mxu1 %v987_v0 }
  0xa8   :  { %767 = vmatprep.mubr.msk.bf16.mxu0 %vm988_vm0, %v987_v0 }
  0xaa   :  { %760 = vmatpush3.bf16.msra.mxu1 %v812_v38 }
 0x15e   :  { %v236_v39 = vpop.f32.mrb[0].mxu0  ;;  %v322_v40 = vpop.f32.mrb[0].mxu1 }
 0x15f   :  { %v707_v41 = vpop.f32.mrb[1].mxu0  ;;  %v323_v42 = vadd.f32 %v322_v40, %v236_v39  ;;  %v725_v43 = vpop.f32.mrb[1].mxu1 }
 0x160   :  { %v239_v44 = vpop.f32.mrb[2].mxu0  ;;  %v325_v45 = vpop.f32.mrb[2].mxu1 }
 0x161   :  { %v708_v46 = vpop.f32.mrb[3].mxu0  ;;  %v326_v47 = vadd.f32 %v325_v45, %v239_v44  ;;  %v726_v48 = vpop.f32.mrb[3].mxu1 }
 0x17a   :  { %v423_v49 = vpop.f32.mrb[4].mxu0 }
 0x17b   :  { %v430_v51 = vadd.f32 %v423_v49, %v323_v42  ;;  %v743_v52 = vpop.f32.mrb[5].mxu0 }
 0x17c   :  { %v426_v53 = vpop.f32.mrb[6].mxu0 }
 0x17d   :  { %v439_v54 = vadd.f32 %v646_v50, %v430_v51  ;;  %v431_v55 = vadd.f32 %v426_v53, %v326_v47  ;;  %v744_v56 = vpop.f32.mrb[7].mxu0 }
 0x17f   :  { %v440_v57 = vadd.f32 %v646_v50, %v431_v55  ;;  %v441_v58 = vmax.f32 %v439_v54, 0.0 }
 0x181   :  { %v442_v59 = vmax.f32 %v440_v57, 0.0 }
 0x183   :  { %v443_v60 = vpack.c.bf16 %v442_v59, %v441_v58 }
 0x185   :  { %762 = vmatmul.mubr.bf16.vlgmr.msra.gmra.mrb[4].mxu1 %v443_v60 }
 0x258   :  { %v549_v62 = vpop.f32.mrb[4].mxu1 }
 0x259   :  { %v550_v63 = vadd.f32 %v647_v61, %v549_v62  ;;  %v763_v0 = vpop.f32.mrb[5].mxu1 }
 0x25a   :  { %v552_v1 = vpop.f32.mrb[6].mxu1 }
 0x25b   :  { %v553_v2 = vadd.f32 %v647_v61, %v552_v1  ;;  %v764_v3 = vpop.f32.mrb[7].mxu1  ;;  %v556_v4 = vmax.f32 %v550_v63, 0.0 }
 0x25d   :  { %v557_v5 = vmax.f32 %v553_v2, 0.0 }
 0x25f   :  { %v559_v6 = vpack.c.bf16 %v557_v5, %v556_v4 }
 0x261   :  { %766 = vmatpush3.bf16.xpose.msra.mxu0 %v559_v6 }
 0x268   :  { %768 = vmatmul.mubr.bf16.vlgmr.msra.gmra.mrb[8].mxu0 %v558_v7 }
 0x33b   :  { %v596_v9 = vpop.f32.mrb[8].mxu0 }
 0x33c   :  { %v597_v10 = vadd.f32 %v596_v9, %v561_v8  ;;  %v769_v11 = vpop.f32.mrb[9].mxu0 }
 0x33d   :  { %v599_v12 = vpop.f32.mrb[10].mxu0 }
 0x33e   :  { %v770_v13 = vpop.f32.mrb[11].mxu0  ;;  %603 = vst.msk [vmem:[#allocation14] sm:$0x1] %vm602_vm2, %v597_v10 }
 0x33f   :  { %956 = shalt.err (!%p953_p10)
}
 0x340   :  { %s957_s28 = scalar_lea.hbm %s1212_s10, 16 }
 0x341   :  { %p958_p11 = scmp.ne.s32.totalorder %s1212_s10, %s957_s28  ;;  %p961_p12 = scmp.lt.u32.totalorder %s957_s28, %s1212_s10 }
 0x343   :  { %p963_p13 = pnand %p961_p12, %p958_p11 }
 0x345   :  { %966 = shalt.err (!%p963_p13)
}
 0x346   :  { %613 = dma.vmem_to_hbm [thread:$0]  %s611_s12, 16, %s1212_s10, [#allocation5]  }
 0x347   :  { %975 = dma.done.wait [#allocation5], 16  }
 0x348   :  { %976 = vsyncadd [#allocation5], 4294967280 }
 0x349   :  { %617 = vsyncpa [#allocation4], 1 }
 0x34a   :  { %618 = vsyncpa [#allocation7], 1 }
 0x34b   :  { %619 = vsyncpa [#allocation10], 1 }
 0x34c   :  { %620 = vsyncpa [#allocation13], 1 }
 0x34d   :  { %621 = vsyncpa [#allocation5], 1 }

// kernel: tpu_custom_call.1
= control target key start
LH: loop header
LB: loop body
LE: loop exit
PB: predicated region body
PF: predicated region fallthrough
CT: control target
= control target key end

     0   :  { %16 = vsyncpa [#allocation4], 0  ;;  %s1202_s0 = inlined_call_operand.hbm [shape: f32[16,112], index: 0, kind: input, shape index: {}]   ;;  %s1203_s1 = inlined_call_operand.hbm [shape: f32[16,112], index: 1, kind: input, shape index: {}]   ;;  %s1204_s2 = inlined_call_operand.hbm [shape: bf16[112,128], index: 2, kind: input, shape index: {}]   ;;  %s1205_s3 = inlined_call_operand.hbm [shape: bf16[112,128], index: 3, kind: input, shape index: {}]   ;;  %s1206_s4 = inlined_call_operand.hbm [shape: bf16[112,128], index: 4, kind: input, shape index: {}]   ;;  %s1207_s5 = inlined_call_operand.vmem [shape: f32[1,128], index: 5, kind: input, shape index: {}]   ;;  %s1208_s6 = inlined_call_operand.hbm [shape: bf16[128,128], index: 6, kind: input, shape index: {}]   ;;  %s1209_s7 = inlined_call_operand.vmem [shape: f32[1,128], index: 7, kind: input, shape index: {}]   ;;  %s1210_s8 = inlined_call_operand.vmem [shape: bf16[1,128], index: 8, kind: input, shape index: {}]   ;;  %s1211_s9 = inlined_call_operand.<no memory space> [shape: f32[1], index: 9, kind: input, shape index: {}]   ;;  %s1212_s10 = inlined_call_operand.hbm [shape: f32[1,16], index: 10, kind: output, shape index: {}]  }
   0x1   :  { %17 = vsyncpa [#allocation7], 0 }
   0x2   :  { %18 = vsyncpa [#allocation10], 0 }
   0x3   :  { %19 = vsyncpa [#allocation13], 0 }
   0x4   :  { %20 = vsyncpa [#allocation5], 0  ;;  %s977_s13 = smov [#allocation6]   ;;  %s813_s17 = scalar_lea.hbm %s1203_s1, 256 }
   0x5   :  { %s38_s14 = sshll.u32 %s977_s13, 4  ;;  %p814_p0 = scmp.ne.s32.totalorder %s1203_s1, %s813_s17  ;;  %s39_s14 = int_to_ptr.vmem [resolvable:$true] %s38_s14 }
   0x6   :  { %p817_p1 = scmp.lt.u32.totalorder %s813_s17, %s1203_s1 }
   0x8   :  { %p819_p2 = pnand %p817_p1, %p814_p0 }
   0xa   :  { %822 = shalt.err (!%p819_p2)
}
   0xb   :  { %s823_s22 = scalar_lea.vmem %s39_s14, 256  ;;  %p828_p4 = scmp.lt.s32.totalorder %s39_s14, %s39_s14 }
   0xc   :  { %p824_p3 = scmp.ne.s32.totalorder %s39_s14, %s823_s22  ;;  %p829_p5 = scmp.lt.s32.totalorder %s823_s22, %s823_s22 }
   0xe   :  { %p830_p6 = por %p829_p5, %p828_p4 }
  0x10   :  { %p831_p7 = pnand %p830_p6, %p824_p3 }
  0x12   :  { %834 = shalt.err (!%p831_p7)
}
  0x13   :  { %s978_s23 = smov 128   ;;  %s979_s24 = smov 8  }
  0x14   :  { %44 = dma.hbm_to_vmem [thread:$0]  %s1203_s1, 256, %s39_s14, [#allocation7], %s978_s23, %s978_s23, %s979_s24  }
  0x15   :  { %s980_s27 = smov [#allocation9]   ;;  %s981_s29 = smov [#allocation3]  }
  0x16   :  { %s62_s28 = sshll.u32 %s980_s27, 4  ;;  %s26_s30 = sshll.u32 %s981_s29, 4  ;;  %s63_s28 = int_to_ptr.vmem [resolvable:$true] %s62_s28  ;;  %s27_s30 = int_to_ptr.vmem [resolvable:$true] %s26_s30 }
  0x17   :  { %s835_s13 = scalar_lea.hbm %s1205_s3, 896 }
  0x18   :  { %p836_p8 = scmp.ne.s32.totalorder %s1205_s3, %s835_s13  ;;  %p839_p9 = scmp.lt.u32.totalorder %s835_s13, %s1205_s3 }
  0x1a   :  { %p841_p10 = pnand %p839_p9, %p836_p8 }
  0x1c   :  { %844 = shalt.err (!%p841_p10)
}
  0x1d   :  { %s845_s1 = scalar_lea.vmem %s63_s28, 896  ;;  %p850_p12 = scmp.lt.s32.totalorder %s63_s28, %s63_s28 }
  0x1e   :  { %p846_p11 = scmp.ne.s32.totalorder %s63_s28, %s845_s1  ;;  %p851_p13 = scmp.lt.s32.totalorder %s845_s1, %s845_s1 }
  0x20   :  { %p852_p0 = por %p851_p13, %p850_p12 }
  0x22   :  { %p853_p1 = pnand %p852_p0, %p846_p11 }
  0x24   :  { %856 = shalt.err (!%p853_p1)
}
  0x25   :  { %s982_s14 = smov 64   ;;  %s983_s19 = smov 4  }
  0x26   :  { %68 = dma.hbm_to_vmem [thread:$0]  %s1205_s3, 896, %s63_s28, [#allocation10], %s982_s14, %s982_s14, %s983_s19  }
  0x27   :  { %s857_s26 = scalar_lea.hbm %s1202_s0, 256 }
  0x28   :  { %p858_p2 = scmp.ne.s32.totalorder %s1202_s0, %s857_s26  ;;  %p861_p3 = scmp.lt.u32.totalorder %s857_s26, %s1202_s0 }
  0x2a   :  { %p863_p4 = pnand %p861_p3, %p858_p2 }
  0x2c   :  { %866 = shalt.err (!%p863_p4)
}
  0x2d   :  { %s867_s13 = scalar_lea.vmem %s27_s30, 256  ;;  %p872_p6 = scmp.lt.s32.totalorder %s27_s30, %s27_s30 }
  0x2e   :  { %p868_p5 = scmp.ne.s32.totalorder %s27_s30, %s867_s13  ;;  %p873_p7 = scmp.lt.s32.totalorder %s867_s13, %s867_s13 }
  0x30   :  { %p874_p8 = por %p873_p7, %p872_p6 }
  0x32   :  { %p875_p9 = pnand %p874_p8, %p868_p5 }
  0x34   :  { %878 = shalt.err (!%p875_p9)
}
  0x35   :  { %32 = dma.hbm_to_vmem [thread:$0]  %s1202_s0, 256, %s27_s30, [#allocation4], %s978_s23, %s978_s23, %s979_s24  }
  0x36   :  { %s984_s15 = smov [#allocation8]   ;;  %s985_s17 = smov [#allocation11]  }
  0x37   :  { %s50_s16 = sshll.u32 %s984_s15, 4  ;;  %s74_s18 = sshll.u32 %s985_s17, 4  ;;  %s51_s16 = int_to_ptr.vmem [resolvable:$true] %s50_s16  ;;  %s75_s18 = int_to_ptr.vmem [resolvable:$true] %s74_s18 }
  0x38   :  { %s879_s21 = scalar_lea.hbm %s1204_s2, 896 }
  0x39   :  { %p880_p10 = scmp.ne.s32.totalorder %s1204_s2, %s879_s21  ;;  %p883_p11 = scmp.lt.u32.totalorder %s879_s21, %s1204_s2 }
  0x3b   :  { %p885_p12 = pnand %p883_p11, %p880_p10 }
  0x3d   :  { %888 = shalt.err (!%p885_p12)
}
  0x3e   :  { %s889_s0 = scalar_lea.vmem %s51_s16, 896  ;;  %p894_p0 = scmp.lt.s32.totalorder %s51_s16, %s51_s16 }
  0x3f   :  { %p890_p13 = scmp.ne.s32.totalorder %s51_s16, %s889_s0  ;;  %p895_p1 = scmp.lt.s32.totalorder %s889_s0, %s889_s0 }
  0x41   :  { %p896_p2 = por %p895_p1, %p894_p0 }
  0x43   :  { %p897_p3 = pnand %p896_p2, %p890_p13 }
  0x45   :  { %900 = shalt.err (!%p897_p3)
}
  0x46   :  { %56 = dma.hbm_to_vmem [thread:$0]  %s1204_s2, 896, %s51_s16, [#allocation7], %s982_s14, %s982_s14, %s983_s19  }
  0x47   :  { %s901_s11 = scalar_lea.hbm %s1206_s4, 896 }
  0x48   :  { %p902_p4 = scmp.ne.s32.totalorder %s1206_s4, %s901_s11  ;;  %p905_p5 = scmp.lt.u32.totalorder %s901_s11, %s1206_s4 }
  0x4a   :  { %p907_p6 = pnand %p905_p5, %p902_p4 }
  0x4c   :  { %910 = shalt.err (!%p907_p6)
}
  0x4d   :  { %s911_s15 = scalar_lea.vmem %s75_s18, 896  ;;  %p916_p8 = scmp.lt.s32.totalorder %s75_s18, %s75_s18 }
  0x4e   :  { %p912_p7 = scmp.ne.s32.totalorder %s75_s18, %s911_s15  ;;  %p917_p9 = scmp.lt.s32.totalorder %s911_s15, %s911_s15 }
  0x50   :  { %p918_p10 = por %p917_p9, %p916_p8 }
  0x52   :  { %p919_p11 = pnand %p918_p10, %p912_p7 }
  0x54   :  { %922 = shalt.err (!%p919_p11)
}
  0x55   :  { %80 = dma.hbm_to_vmem [thread:$0]  %s1206_s4, 896, %s75_s18, [#allocation10], %s982_s14, %s982_s14, %s983_s19  }
  0x56   :  { %s986_s17 = smov [#allocation12]   ;;  %s923_s22 = scalar_lea.hbm %s1208_s6, 1024 }
  0x57   :  { %s88_s1 = sshll.u32 %s986_s17, 4  ;;  %p924_p12 = scmp.ne.s32.totalorder %s1208_s6, %s923_s22  ;;  %s89_s1 = int_to_ptr.vmem [resolvable:$true] %s88_s1 }
  0x58   :  { %p927_p13 = scmp.lt.u32.totalorder %s923_s22, %s1208_s6 }
  0x5a   :  { %p929_p0 = pnand %p927_p13, %p924_p12 }
  0x5c   :  { %932 = shalt.err (!%p929_p0)
}
  0x5d   :  { %s933_s23 = scalar_lea.vmem %s89_s1, 1024  ;;  %p938_p2 = scmp.lt.s32.totalorder %s89_s1, %s89_s1 }
  0x5e   :  { %p934_p1 = scmp.ne.s32.totalorder %s89_s1, %s933_s23  ;;  %p939_p3 = scmp.lt.s32.totalorder %s933_s23, %s933_s23 }
  0x60   :  { %p940_p4 = por %p939_p3, %p938_p2 }
  0x62   :  { %p941_p5 = pnand %p940_p4, %p934_p1 }
  0x64   :  { %944 = shalt.err (!%p941_p5)
}
  0x65   :  { %94 = dma.hbm_to_vmem [thread:$0]  %s1208_s6, 1024, %s89_s1, [#allocation13], %s982_s14, %s982_s14, %s983_s19  }
  0x66   :  { %967 = dma.done.wait [#allocation4], 256  }
  0x67   :  { %968 = vsyncadd [#allocation4], 4294967040 }
  0x68   :  { %969 = dma.done.wait [#allocation7], 1152  }
  0x69   :  { %970 = vsyncadd [#allocation7], 4294966144 }
  0x6a   :  { %971 = dma.done.wait [#allocation10], 1792  }
  0x6b   :  { %972 = vsyncadd [#allocation10], 4294965504 }
  0x6c   :  { %973 = dma.done.wait [#allocation13], 1024  }
  0x6d   :  { %974 = vsyncadd [#allocation13], 4294966272  ;;  %v987_v0 = vmov 0.0   ;;  %vm988_vm0 = vmmov 0   ;;  %v784_v1 = vld [vmem:[#allocation9] sm:$0xff]   ;;  %v785_v2 = vld [vmem:[#allocation8] sm:$0xff]  }
  0x6e   :  { %691 = vmatprep.subr.bf16.mxu0 %v987_v0  ;;  %709 = vmatprep.subr.bf16.mxu1 %v987_v0  ;;  %v786_v3 = vld [vmem:[#allocation9 + $0x8] sm:$0xff]   ;;  %v787_v4 = vld [vmem:[#allocation8 + $0x8] sm:$0xff]   ;;  %v789_v6 = vld [vmem:[#allocation8 + $0x10] sm:$0xff]   ;;  %vm198_vm1 = vcmask 916480   ;;  %vm602_vm2 = vcmask 122880  }
  0x6f   :  { %705 = vmatprep.mubr.msk.bf16.mxu0 %vm988_vm0, %v987_v0  ;;  %723 = vmatprep.mubr.msk.bf16.mxu1 %vm988_vm0, %v987_v0  ;;  %v788_v5 = vld [vmem:[#allocation9 + $0x10] sm:$0xff]   ;;  %v790_v7 = vld [vmem:[#allocation9 + $0x18] sm:$0xff]   ;;  %v791_v8 = vld [vmem:[#allocation8 + $0x18] sm:$0xff]  }
  0x70   :  { %692 = vmatpush3.bf16.msra.mxu0 %v784_v1  ;;  %710 = vmatpush3.bf16.msra.mxu1 %v785_v2  ;;  %v792_v9 = vld [vmem:[#allocation9 + $0x20] sm:$0xff]   ;;  %v793_v10 = vld [vmem:[#allocation8 + $0x20] sm:$0xff]   ;;  %v795_v12 = vld [vmem:[#allocation8 + $0x28] sm:$0xff]  }
  0x71   :  { %693 = vmatprep.subr.bf16.mxu0 %v987_v0  ;;  %711 = vmatprep.subr.bf16.mxu1 %v987_v0  ;;  %v794_v11 = vld [vmem:[#allocation9 + $0x28] sm:$0xff]   ;;  %v796_v13 = vld [vmem:[#allocation9 + $0x30] sm:$0xff]   ;;  %v122_v14 = vld [vmem:[#allocation6] sm:$0xff] }
  0x72   :  { %v123_v15 = vld [vmem:[#allocation6 + $0x8] sm:$0xff]  ;;  %v797_v16 = vld [vmem:[#allocation8 + $0x30] sm:$0xff]   ;;  %v120_v17 = vld [vmem:[#allocation3] sm:$0xff] }
  0x73   :  { %v121_v18 = vld [vmem:[#allocation3 + $0x8] sm:$0xff]  ;;  %v798_v19 = vld [vmem:[#allocation11] sm:$0xff]   ;;  %v141_v20 = vpack.c.bf16 %v123_v15, %v122_v14  ;;  %v799_v22 = vld [vmem:[#allocation11 + $0x8] sm:$0xff]   ;;  %v124_v27 = vmul.f32 %v122_v14, %v120_v17 }
  0x74   :  { %694 = vmatpush3.bf16.msra.mxu0 %v786_v3  ;;  %712 = vmatpush3.bf16.msra.mxu1 %v787_v4  ;;  %v126_v21 = vpack.c.bf16 %v121_v18, %v120_v17  ;;  %v800_v23 = vld [vmem:[#allocation11 + $0x10] sm:$0xff]   ;;  %v801_v24 = vld [vmem:[#allocation11 + $0x18] sm:$0xff]   ;;  %v802_v25 = vld [vmem:[#allocation11 + $0x20] sm:$0xff]   ;;  %v125_v28 = vmul.f32 %v123_v15, %v121_v18 }
  0x75   :  { %695 = vmatprep.subr.bf16.mxu0 %v987_v0  ;;  %713 = vmatprep.subr.bf16.mxu1 %v987_v0  ;;  %v803_v26 = vld [vmem:[#allocation11 + $0x28] sm:$0xff]   ;;  %v804_v29 = vld [vmem:[#allocation11 + $0x30] sm:$0xff]   ;;  %v805_v31 = vld [vmem:[#allocation12] sm:$0xff]  }
  0x76   :  { %v329_v30 = vpack.c.bf16 %v125_v28, %v124_v27  ;;  %v806_v32 = vld [vmem:[#allocation12 + $0x8] sm:$0xff]   ;;  %v807_v33 = vld [vmem:[#allocation12 + $0x10] sm:$0xff]   ;;  %v808_v34 = vld [vmem:[#allocation12 + $0x18] sm:$0xff]  }
  0x77   :  { %v809_v35 = vld [vmem:[#allocation12 + $0x20] sm:$0xff]   ;;  %v810_v36 = vld [vmem:[#allocation12 + $0x28] sm:$0xff]   ;;  %v811_v37 = vld [vmem:[#allocation12 + $0x30] sm:$0xff]  }
  0x78   :  { %696 = vmatpush3.bf16.msra.mxu0 %v788_v5  ;;  %714 = vmatpush3.bf16.msra.mxu1 %v789_v6  ;;  %v812_v38 = vld [vmem:[#allocation12 + $0x38] sm:$0xff]  }
  0x79   :  { %697 = vmatprep.subr.bf16.mxu0 %v987_v0  ;;  %715 = vmatprep.subr.bf16.mxu1 %v987_v0  ;;  %v646_v50 = vld [vmem:[%s1207_s5] ss:$0 sm:$0xff] }
  0x7a   :  { %v647_v61 = vld [vmem:[%s1209_s7] ss:$0 sm:$0xff]  ;;  %s989_s7 = smov [#allocation14]  }
  0x7b   :  { %s610_s12 = sshll.u32 %s989_s7, 4  ;;  %s611_s12 = int_to_ptr.vmem [resolvable:$true] %s610_s12 }
  0x7c   :  { %698 = vmatpush3.bf16.msra.mxu0 %v790_v7  ;;  %716 = vmatpush3.bf16.msra.mxu1 %v791_v8  ;;  %v558_v7 = vld [vmem:[%s1210_s8] sm:$0x1]  ;;  %v561_v8 = vstv %s1211_s9  ;;  %s945_s13 = scalar_lea.vmem %s611_s12, 16  ;;  %s949_s3 = scalar_lea.vmem %s611_s12, 32 }
  0x7d   :  { %699 = vmatprep.subr.bf16.mxu0 %v987_v0  ;;  %717 = vmatprep.subr.bf16.mxu1 %v987_v0  ;;  %p946_p6 = scmp.ne.s32.totalorder %s611_s12, %s945_s13  ;;  %p950_p7 = scmp.lt.s32.totalorder %s611_s12, %s611_s12 }
  0x7e   :  { %p951_p8 = scmp.lt.s32.totalorder %s949_s3, %s945_s13 }
  0x80   :  { %700 = vmatpush3.bf16.msra.mxu0 %v792_v9  ;;  %718 = vmatpush3.bf16.msra.mxu1 %v793_v10  ;;  %p952_p9 = por %p951_p8, %p950_p7 }
  0x81   :  { %701 = vmatprep.subr.bf16.mxu0 %v987_v0  ;;  %719 = vmatprep.subr.bf16.mxu1 %v987_v0 }
  0x82   :  { %p953_p10 = pnand %p952_p9, %p946_p6 }
  0x84   :  { %702 = vmatpush3.bf16.msra.mxu0 %v794_v11  ;;  %720 = vmatpush3.bf16.msra.mxu1 %v795_v12 }
  0x85   :  { %703 = vmatprep.subr.bf16.mxu0 %v987_v0  ;;  %721 = vmatprep.subr.bf16.mxu1 %v987_v0 }
  0x88   :  { %704 = vmatpush3.bf16.msra.mxu0 %v796_v13  ;;  %722 = vmatpush3.bf16.msra.mxu1 %v797_v16 }
  0x89   :  { %727 = vmatprep.subr.bf16.mxu0 %v987_v0  ;;  %745 = vmatprep.subr.bf16.mxu1 %v987_v0 }
  0x8b   :  { %706 = vmatmul.mubr.msk.bf16.vlgmr.msra.gmra.mrb[0].mxu0 %vm198_vm1, %v141_v20  ;;  %724 = vmatmul.mubr.msk.bf16.vlgmr.msra.gmra.mrb[0].mxu1 %vm198_vm1, %v126_v21 }
  0x8c   :  { %728 = vmatpush3.bf16.msra.mxu0 %v798_v19  ;;  %741 = vmatprep.mubr.msk.bf16.mxu0 %vm988_vm0, %v987_v0 }
  0x8d   :  { %729 = vmatprep.subr.bf16.mxu0 %v987_v0  ;;  %761 = vmatprep.mubr.msk.bf16.mxu1 %vm988_vm0, %v987_v0 }
  0x8e   :  { %746 = vmatpush3.bf16.msra.mxu1 %v805_v31 }
  0x8f   :  { %747 = vmatprep.subr.bf16.mxu1 %v987_v0 }
  0x90   :  { %730 = vmatpush3.bf16.msra.mxu0 %v799_v22 }
  0x91   :  { %731 = vmatprep.subr.bf16.mxu0 %v987_v0 }
  0x92   :  { %748 = vmatpush3.bf16.msra.mxu1 %v806_v32 }
  0x93   :  { %749 = vmatprep.subr.bf16.mxu1 %v987_v0 }
  0x94   :  { %732 = vmatpush3.bf16.msra.mxu0 %v800_v23 }
  0x95   :  { %733 = vmatprep.subr.bf16.mxu0 %v987_v0 }
  0x96   :  { %750 = vmatpush3.bf16.msra.mxu1 %v807_v33 }
  0x97   :  { %751 = vmatprep.subr.bf16.mxu1 %v987_v0 }
  0x98   :  { %734 = vmatpush3.bf16.msra.mxu0 %v801_v24 }
  0x99   :  { %735 = vmatprep.subr.bf16.mxu0 %v987_v0 }
  0x9a   :  { %752 = vmatpush3.bf16.msra.mxu1 %v808_v34 }
  0x9b   :  { %753 = vmatprep.subr.bf16.mxu1 %v987_v0 }
  0x9c   :  { %736 = vmatpush3.bf16.msra.mxu0 %v802_v25 }
  0x9d   :  { %737 = vmatprep.subr.bf16.mxu0 %v987_v0 }
  0x9e   :  { %754 = vmatpush3.bf16.msra.mxu1 %v809_v35 }
  0x9f   :  { %755 = vmatprep.subr.bf16.mxu1 %v987_v0 }
  0xa0   :  { %738 = vmatpush3.bf16.msra.mxu0 %v803_v26 }
  0xa1   :  { %739 = vmatprep.subr.bf16.mxu0 %v987_v0 }
  0xa2   :  { %756 = vmatpush3.bf16.msra.mxu1 %v810_v36 }
  0xa3   :  { %757 = vmatprep.subr.bf16.mxu1 %v987_v0 }
  0xa4   :  { %740 = vmatpush3.bf16.msra.mxu0 %v804_v29 }
  0xa5   :  { %765 = vmatprep.subr.bf16.mxu0 %v987_v0 }
  0xa6   :  { %758 = vmatpush3.bf16.msra.mxu1 %v811_v37 }
  0xa7   :  { %742 = vmatmul.mubr.msk.bf16.vlgmr.msra.gmra.mrb[4].mxu0 %vm198_vm1, %v329_v30  ;;  %759 = vmatprep.subr.bf16.mxu1 %v987_v0 }
  0xa8   :  { %767 = vmatprep.mubr.msk.bf16.mxu0 %vm988_vm0, %v987_v0 }
  0xaa   :  { %760 = vmatpush3.bf16.msra.mxu1 %v812_v38 }
 0x15e   :  { %v236_v39 = vpop.f32.mrb[0].mxu0  ;;  %v322_v40 = vpop.f32.mrb[0].mxu1 }
 0x15f   :  { %v707_v41 = vpop.f32.mrb[1].mxu0  ;;  %v323_v42 = vadd.f32 %v322_v40, %v236_v39  ;;  %v725_v43 = vpop.f32.mrb[1].mxu1 }
 0x160   :  { %v239_v44 = vpop.f32.mrb[2].mxu0  ;;  %v325_v45 = vpop.f32.mrb[2].mxu1 }
 0x161   :  { %v708_v46 = vpop.f32.mrb[3].mxu0  ;;  %v326_v47 = vadd.f32 %v325_v45, %v239_v44  ;;  %v726_v48 = vpop.f32.mrb[3].mxu1 }
 0x17a   :  { %v423_v49 = vpop.f32.mrb[4].mxu0 }
 0x17b   :  { %v430_v51 = vadd.f32 %v423_v49, %v323_v42  ;;  %v743_v52 = vpop.f32.mrb[5].mxu0 }
 0x17c   :  { %v426_v53 = vpop.f32.mrb[6].mxu0 }
 0x17d   :  { %v439_v54 = vadd.f32 %v646_v50, %v430_v51  ;;  %v431_v55 = vadd.f32 %v426_v53, %v326_v47  ;;  %v744_v56 = vpop.f32.mrb[7].mxu0 }
 0x17f   :  { %v440_v57 = vadd.f32 %v646_v50, %v431_v55  ;;  %v441_v58 = vmax.f32 %v439_v54, 0.0 }
 0x181   :  { %v442_v59 = vmax.f32 %v440_v57, 0.0 }
 0x183   :  { %v443_v60 = vpack.c.bf16 %v442_v59, %v441_v58 }
 0x185   :  { %762 = vmatmul.mubr.bf16.vlgmr.msra.gmra.mrb[4].mxu1 %v443_v60 }
 0x258   :  { %v549_v62 = vpop.f32.mrb[4].mxu1 }
 0x259   :  { %v550_v63 = vadd.f32 %v647_v61, %v549_v62  ;;  %v763_v0 = vpop.f32.mrb[5].mxu1 }
 0x25a   :  { %v552_v1 = vpop.f32.mrb[6].mxu1 }
 0x25b   :  { %v553_v2 = vadd.f32 %v647_v61, %v552_v1  ;;  %v764_v3 = vpop.f32.mrb[7].mxu1  ;;  %v556_v4 = vmax.f32 %v550_v63, 0.0 }
 0x25d   :  { %v557_v5 = vmax.f32 %v553_v2, 0.0 }
 0x25f   :  { %v559_v6 = vpack.c.bf16 %v557_v5, %v556_v4 }
 0x261   :  { %766 = vmatpush3.bf16.xpose.msra.mxu0 %v559_v6 }
 0x268   :  { %768 = vmatmul.mubr.bf16.vlgmr.msra.gmra.mrb[8].mxu0 %v558_v7 }
 0x33b   :  { %v596_v9 = vpop.f32.mrb[8].mxu0 }
 0x33c   :  { %v597_v10 = vadd.f32 %v596_v9, %v561_v8  ;;  %v769_v11 = vpop.f32.mrb[9].mxu0 }
 0x33d   :  { %v599_v12 = vpop.f32.mrb[10].mxu0 }
 0x33e   :  { %v770_v13 = vpop.f32.mrb[11].mxu0  ;;  %603 = vst.msk [vmem:[#allocation14] sm:$0x1] %vm602_vm2, %v597_v10 }
 0x33f   :  { %956 = shalt.err (!%p953_p10)
}
 0x340   :  { %s957_s28 = scalar_lea.hbm %s1212_s10, 16 }
 0x341   :  { %p958_p11 = scmp.ne.s32.totalorder %s1212_s10, %s957_s28  ;;  %p961_p12 = scmp.lt.u32.totalorder %s957_s28, %s1212_s10 }
 0x343   :  { %p963_p13 = pnand %p961_p12, %p958_p11 }
 0x345   :  { %966 = shalt.err (!%p963_p13)
}
 0x346   :  { %613 = dma.vmem_to_hbm [thread:$0]  %s611_s12, 16, %s1212_s10, [#allocation5]  }
 0x347   :  { %975 = dma.done.wait [#allocation5], 16  }
 0x348   :  { %976 = vsyncadd [#allocation5], 4294967280 }
 0x349   :  { %617 = vsyncpa [#allocation4], 1 }
 0x34a   :  { %618 = vsyncpa [#allocation7], 1 }
 0x34b   :  { %619 = vsyncpa [#allocation10], 1 }
 0x34c   :  { %620 = vsyncpa [#allocation13], 1 }
 0x34d   :  { %621 = vsyncpa [#allocation5], 1 }

</bundles_post_ra>
